<compile_context>
chip_gen: v7x
topology: tpu7x:2x2x1
jax: 0.10.0
libtpu: 0.0.40
codegen_flags: <defaults>
</compile_context>

<pallas_src>
import numpy as np
import jax
import jax.numpy as jnp
from jax.experimental import pallas as pl
from jax.experimental.pallas import tpu as pltpu

_LANE = 128
_SUBLANE = 8


def _analyze_index(index, n_channels, out_channels, G, exp):
    """Host-side static analysis of the channel-gather index.

    Returns:
      subsets   : list of tuples of distinct source channels (values in [0, C));
                  the max over each tuple is computed once per tile.
      out_terms : per output channel, a list of (subset_id, weight) pairs with
                  weight = multiplicity / avgpool_size, so that
                  out_k = sum_s weight * max_s  ==  MaxPool3d + AvgPool3d.
    """
    avgpool_size = (n_channels * exp) // G
    expansion = out_channels * n_channels * exp
    index = np.asarray(index, dtype=np.int64)
    assert (n_channels * exp) % G == 0, "n_channels*exp must be divisible by G"
    assert expansion == out_channels * avgpool_size * G
    assert index.shape == (expansion,)
    assert np.all((index >= 0) & (index < n_channels * exp)), "index out of range"

    # repeat(1, exp, 1, 1): repeated channel j maps to original channel j % C.
    eff = (index % n_channels).reshape(out_channels, avgpool_size, G)

    subset_id = {}
    subsets = []
    out_terms = []
    inv_a = 1.0 / float(avgpool_size)
    for k in range(out_channels):
        row = {}
        for a in range(avgpool_size):
            key = tuple(sorted(set(int(c) for c in eff[k, a])))
            if key not in subset_id:
                subset_id[key] = len(subsets)
                subsets.append(key)
            sid = subset_id[key]
            row[sid] = row.get(sid, 0) + 1
        out_terms.append([(sid, cnt * inv_a) for sid, cnt in sorted(row.items())])
    return subsets, out_terms


def _make_kernel(subsets, out_terms):
    # TODO(synk): chunk the unrolled subset/combine loops (or fall back to the
    # non-deduped per-group max) if n_subsets grows toward 2**C on big configs.
    def kernel(x_ref, o_ref):
        # x_ref: (C, row_tile, 128) dense channel tiles (batch dim squeezed)
        # o_ref: (outC, row_tile, 128)
        xv = x_ref[...].astype(jnp.float32)
        # Deduplicated grouped maxima, each a dense (row_tile, 128) value.
        sub = []
        for chans in subsets:
            m = xv[chans[0]]
            for c in chans[1:]:
                m = jnp.maximum(m, xv[c])
            sub.append(m)
        # Grouped mean: static nonzero weights accumulated in registers (no
        # scratch, no MXU, no extra operand).
        for k, terms in enumerate(out_terms):
            sid0, w0 = terms[0]
            acc = sub[sid0] * w0
            for sid, w in terms[1:]:
                acc = acc + sub[sid] * w
            o_ref[k] = acc.astype(o_ref.dtype)

    return kernel


def _pick_row_tile(rows, c_in, c_out, itemsize):
    """Row tile (second-minor dim): full extent when it fits, otherwise a
    multiple of 8 sized so the double-buffered in+out blocks stay well inside
    v7x's 64 MiB VMEM (and v5e/v6e's scoped limits)."""
    budget = 12 * 1024 * 1024  # single-buffer in+out bytes per grid step
    per_row = (c_in + c_out) * _LANE * itemsize
    max_rt = max(_SUBLANE, budget // per_row)
    if rows <= max_rt:
        return rows
    rt = (min(max_rt, rows) // _SUBLANE) * _SUBLANE
    rt = max(rt, _SUBLANE)
    while rt > _SUBLANE and rows % rt != 0:
        rt -= _SUBLANE
    return rt


def prcn_v1_noconv(x, index, n_channels, out_channels, G, exp, *, row_tile=None):
    """x: [N, C, H, W], index: int array of length outC*C*exp."""
    N, C, H, W_sp = x.shape
    assert C == n_channels

    subsets, out_terms = _analyze_index(index, n_channels, out_channels, G, exp)

    HW = H * W_sp
    rows = -(-HW // _LANE)
    HW_pad = rows * _LANE

    # Native layout: free row-major reshape to [N, C, rows, 128]; only pads HBM
    # when the spatial extent is not lane-aligned.
    x_r = x.reshape(N, C, HW)
    if HW_pad != HW:
        x_r = jnp.pad(x_r, ((0, 0), (0, 0), (0, HW_pad - HW)))
    x4 = x_r.reshape(N, C, rows, _LANE)

    itemsize = jnp.dtype(x.dtype).itemsize
    if row_tile is None:
        row_tile = _pick_row_tile(rows, C, out_channels, itemsize)
    n_row_tiles = pl.cdiv(rows, row_tile)

    # VMEM budget from the actual (double-buffered) in+out block footprint.
    block_bytes = (C + out_channels) * row_tile * _LANE * itemsize
    vmem_limit = int(min(100 << 20, max(2 * block_bytes + (4 << 20), 16 << 20)))

    max_flops = sum(len(s) - 1 for s in subsets)
    comb_flops = sum(2 * len(t) - 1 for t in out_terms)
    cost = pl.CostEstimate(
        flops=int((max_flops + comb_flops) * N * rows * _LANE),
        transcendentals=0,
        bytes_accessed=int((C + out_channels) * N * rows * _LANE * itemsize),
    )

    out4 = pl.pallas_call(
        _make_kernel(subsets, out_terms),
        out_shape=jax.ShapeDtypeStruct((N, out_channels, rows, _LANE), x.dtype),
        grid=(N, n_row_tiles),
        in_specs=[
            pl.BlockSpec((None, C, row_tile, _LANE), lambda n, r: (n, 0, r, 0)),
        ],
        out_specs=pl.BlockSpec((None, out_channels, row_tile, _LANE),
                               lambda n, r: (n, 0, r, 0)),
        compiler_params=pltpu.CompilerParams(
            dimension_semantics=("parallel", "parallel"),
            vmem_limit_bytes=vmem_limit,
        ),
        cost_estimate=cost,
    )(x4)

    out = out4.reshape(N, out_channels, HW_pad)
    if HW_pad != HW:
        out = out[:, :, :HW]
    return out.reshape(N, out_channels, H, W_sp)


def prcn_v1_noconv_reference(x, index, n_channels, out_channels, G, exp):
    """Pure-JAX reference mirroring the PyTorch forward."""
    rep = jnp.tile(x, (1, exp, 1, 1))
    gathered = rep[:, jnp.asarray(index), :, :]
    N, Cexp, H, W = gathered.shape
    m = gathered.reshape(N, Cexp // G, G, H, W).max(axis=2)            # MaxPool3d((G,1,1))
    avgpool_size = (n_channels * exp) // G
    out = m.reshape(N, out_channels, avgpool_size, H, W).mean(axis=2)  # AvgPool3d
    return out


if __name__ == "__main__":
    # Module hyperparameters (small, consistent with the forward pass).
    n_channels = 4
    out_channels = 4
    G = 4
    exp = 4
    N, H, W = 2, 16, 16
    expansion = out_channels * n_channels * exp  # 64

    # Deterministic synthetic "randomList" (values index the repeated channels).
    rng = np.random.default_rng(0)
    random_list = rng.integers(0, n_channels * exp, size=(expansion,), dtype=np.int64)

    # Deterministic input.
    key = jax.random.PRNGKey(0)
    x = jax.random.normal(key, (N, n_channels, H, W), dtype=jnp.float32)

    out = prcn_v1_noconv(x, random_list, n_channels, out_channels, G, exp)
    out = jax.block_until_ready(out)

    ref = prcn_v1_noconv_reference(x, random_list, n_channels, out_channels, G, exp)
    ref = jax.block_until_ready(ref)

    assert out.shape == (N, out_channels, H, W), out.shape
    assert np.allclose(np.asarray(out), np.asarray(ref), atol=1e-5, rtol=1e-5)
    print("KERNEL_OK")
</pallas_src>

<mosaic_0001>
module attributes {stable_mosaic.version = 11 : i64} {
  func.func @kernel(%arg0: i32, %arg1: i32, %arg2: memref<1x4x2x128xf32, #tpu.memory_space<vmem>>, %arg3: memref<1x4x2x128xf32, #tpu.memory_space<vmem>>) attributes {dimension_semantics = [#tpu.dimension_semantics<parallel>, #tpu.dimension_semantics<parallel>], iteration_bounds = array<i64: 2, 1>, scalar_prefetch = 0 : i64, scratch_operands = 0 : i64, tpu.core_type = #tpu.core_type<tc>, window_params = [{transform_indices = @transform_0, window_bounds = array<i64: 1, 4, 2, 128>}, {transform_indices = @transform_1, window_bounds = array<i64: 1, 4, 2, 128>}]} {
    %c0 = arith.constant 0 : index
    %c0_0 = arith.constant 0 : index
    %c0_1 = arith.constant 0 : index
    %c0_2 = arith.constant 0 : index
    %0 = vector.load %arg2[%c0, %c0_0, %c0_1, %c0_2] : memref<1x4x2x128xf32, #tpu.memory_space<vmem>>, vector<1x4x2x128xf32>
    %1 = vector.shape_cast %0 : vector<1x4x2x128xf32> to vector<4x2x128xf32>
    %2 = vector.extract_strided_slice %1 {offsets = [0, 0, 0], sizes = [1, 2, 128], strides = [1, 1, 1]} : vector<4x2x128xf32> to vector<1x2x128xf32>
    %3 = vector.shape_cast %2 : vector<1x2x128xf32> to vector<2x128xf32>
    %4 = vector.extract_strided_slice %1 {offsets = [1, 0, 0], sizes = [1, 2, 128], strides = [1, 1, 1]} : vector<4x2x128xf32> to vector<1x2x128xf32>
    %5 = vector.shape_cast %4 : vector<1x2x128xf32> to vector<2x128xf32>
    %6 = arith.maximumf %3, %5 : vector<2x128xf32>
    %7 = vector.extract_strided_slice %1 {offsets = [2, 0, 0], sizes = [1, 2, 128], strides = [1, 1, 1]} : vector<4x2x128xf32> to vector<1x2x128xf32>
    %8 = vector.shape_cast %7 : vector<1x2x128xf32> to vector<2x128xf32>
    %9 = arith.maximumf %6, %8 : vector<2x128xf32>
    %10 = vector.extract_strided_slice %1 {offsets = [0, 0, 0], sizes = [1, 2, 128], strides = [1, 1, 1]} : vector<4x2x128xf32> to vector<1x2x128xf32>
    %11 = vector.shape_cast %10 : vector<1x2x128xf32> to vector<2x128xf32>
    %12 = vector.extract_strided_slice %1 {offsets = [1, 0, 0], sizes = [1, 2, 128], strides = [1, 1, 1]} : vector<4x2x128xf32> to vector<1x2x128xf32>
    %13 = vector.shape_cast %12 : vector<1x2x128xf32> to vector<2x128xf32>
    %14 = arith.maximumf %11, %13 : vector<2x128xf32>
    %15 = vector.extract_strided_slice %1 {offsets = [1, 0, 0], sizes = [1, 2, 128], strides = [1, 1, 1]} : vector<4x2x128xf32> to vector<1x2x128xf32>
    %16 = vector.shape_cast %15 : vector<1x2x128xf32> to vector<2x128xf32>
    %17 = vector.extract_strided_slice %1 {offsets = [2, 0, 0], sizes = [1, 2, 128], strides = [1, 1, 1]} : vector<4x2x128xf32> to vector<1x2x128xf32>
    %18 = vector.shape_cast %17 : vector<1x2x128xf32> to vector<2x128xf32>
    %19 = arith.maximumf %16, %18 : vector<2x128xf32>
    %20 = vector.extract_strided_slice %1 {offsets = [0, 0, 0], sizes = [1, 2, 128], strides = [1, 1, 1]} : vector<4x2x128xf32> to vector<1x2x128xf32>
    %21 = vector.shape_cast %20 : vector<1x2x128xf32> to vector<2x128xf32>
    %22 = vector.extract_strided_slice %1 {offsets = [1, 0, 0], sizes = [1, 2, 128], strides = [1, 1, 1]} : vector<4x2x128xf32> to vector<1x2x128xf32>
    %23 = vector.shape_cast %22 : vector<1x2x128xf32> to vector<2x128xf32>
    %24 = arith.maximumf %21, %23 : vector<2x128xf32>
    %25 = vector.extract_strided_slice %1 {offsets = [3, 0, 0], sizes = [1, 2, 128], strides = [1, 1, 1]} : vector<4x2x128xf32> to vector<1x2x128xf32>
    %26 = vector.shape_cast %25 : vector<1x2x128xf32> to vector<2x128xf32>
    %27 = arith.maximumf %24, %26 : vector<2x128xf32>
    %28 = vector.extract_strided_slice %1 {offsets = [0, 0, 0], sizes = [1, 2, 128], strides = [1, 1, 1]} : vector<4x2x128xf32> to vector<1x2x128xf32>
    %29 = vector.shape_cast %28 : vector<1x2x128xf32> to vector<2x128xf32>
    %30 = vector.extract_strided_slice %1 {offsets = [2, 0, 0], sizes = [1, 2, 128], strides = [1, 1, 1]} : vector<4x2x128xf32> to vector<1x2x128xf32>
    %31 = vector.shape_cast %30 : vector<1x2x128xf32> to vector<2x128xf32>
    %32 = arith.maximumf %29, %31 : vector<2x128xf32>
    %33 = vector.extract_strided_slice %1 {offsets = [0, 0, 0], sizes = [1, 2, 128], strides = [1, 1, 1]} : vector<4x2x128xf32> to vector<1x2x128xf32>
    %34 = vector.shape_cast %33 : vector<1x2x128xf32> to vector<2x128xf32>
    %35 = vector.extract_strided_slice %1 {offsets = [1, 0, 0], sizes = [1, 2, 128], strides = [1, 1, 1]} : vector<4x2x128xf32> to vector<1x2x128xf32>
    %36 = vector.shape_cast %35 : vector<1x2x128xf32> to vector<2x128xf32>
    %37 = arith.maximumf %34, %36 : vector<2x128xf32>
    %38 = vector.extract_strided_slice %1 {offsets = [2, 0, 0], sizes = [1, 2, 128], strides = [1, 1, 1]} : vector<4x2x128xf32> to vector<1x2x128xf32>
    %39 = vector.shape_cast %38 : vector<1x2x128xf32> to vector<2x128xf32>
    %40 = arith.maximumf %37, %39 : vector<2x128xf32>
    %41 = vector.extract_strided_slice %1 {offsets = [3, 0, 0], sizes = [1, 2, 128], strides = [1, 1, 1]} : vector<4x2x128xf32> to vector<1x2x128xf32>
    %42 = vector.shape_cast %41 : vector<1x2x128xf32> to vector<2x128xf32>
    %43 = arith.maximumf %40, %42 : vector<2x128xf32>
    %44 = vector.extract_strided_slice %1 {offsets = [0, 0, 0], sizes = [1, 2, 128], strides = [1, 1, 1]} : vector<4x2x128xf32> to vector<1x2x128xf32>
    %45 = vector.shape_cast %44 : vector<1x2x128xf32> to vector<2x128xf32>
    %46 = vector.extract_strided_slice %1 {offsets = [3, 0, 0], sizes = [1, 2, 128], strides = [1, 1, 1]} : vector<4x2x128xf32> to vector<1x2x128xf32>
    %47 = vector.shape_cast %46 : vector<1x2x128xf32> to vector<2x128xf32>
    %48 = arith.maximumf %45, %47 : vector<2x128xf32>
    %49 = vector.extract_strided_slice %1 {offsets = [2, 0, 0], sizes = [1, 2, 128], strides = [1, 1, 1]} : vector<4x2x128xf32> to vector<1x2x128xf32>
    %50 = vector.shape_cast %49 : vector<1x2x128xf32> to vector<2x128xf32>
    %51 = vector.extract_strided_slice %1 {offsets = [3, 0, 0], sizes = [1, 2, 128], strides = [1, 1, 1]} : vector<4x2x128xf32> to vector<1x2x128xf32>
    %52 = vector.shape_cast %51 : vector<1x2x128xf32> to vector<2x128xf32>
    %53 = arith.maximumf %50, %52 : vector<2x128xf32>
    %54 = vector.extract_strided_slice %1 {offsets = [1, 0, 0], sizes = [1, 2, 128], strides = [1, 1, 1]} : vector<4x2x128xf32> to vector<1x2x128xf32>
    %55 = vector.shape_cast %54 : vector<1x2x128xf32> to vector<2x128xf32>
    %56 = vector.extract_strided_slice %1 {offsets = [2, 0, 0], sizes = [1, 2, 128], strides = [1, 1, 1]} : vector<4x2x128xf32> to vector<1x2x128xf32>
    %57 = vector.shape_cast %56 : vector<1x2x128xf32> to vector<2x128xf32>
    %58 = arith.maximumf %55, %57 : vector<2x128xf32>
    %59 = vector.extract_strided_slice %1 {offsets = [3, 0, 0], sizes = [1, 2, 128], strides = [1, 1, 1]} : vector<4x2x128xf32> to vector<1x2x128xf32>
    %60 = vector.shape_cast %59 : vector<1x2x128xf32> to vector<2x128xf32>
    %61 = arith.maximumf %58, %60 : vector<2x128xf32>
    %cst = arith.constant 2.500000e-01 : f32
    %62 = vector.broadcast %cst : f32 to vector<2x128xf32>
    %63 = arith.mulf %9, %62 : vector<2x128xf32>
    %cst_3 = arith.constant 2.500000e-01 : f32
    %64 = vector.broadcast %cst_3 : f32 to vector<2x128xf32>
    %65 = arith.mulf %14, %64 : vector<2x128xf32>
    %66 = arith.addf %63, %65 : vector<2x128xf32>
    %cst_4 = arith.constant 2.500000e-01 : f32
    %67 = vector.broadcast %cst_4 : f32 to vector<2x128xf32>
    %68 = arith.mulf %19, %67 : vector<2x128xf32>
    %69 = arith.addf %66, %68 : vector<2x128xf32>
    %cst_5 = arith.constant 2.500000e-01 : f32
    %70 = vector.broadcast %cst_5 : f32 to vector<2x128xf32>
    %71 = arith.mulf %27, %70 : vector<2x128xf32>
    %72 = arith.addf %69, %71 : vector<2x128xf32>
    %c0_6 = arith.constant 0 : index
    %c0_7 = arith.constant 0 : index
    %c0_8 = arith.constant 0 : index
    %c0_9 = arith.constant 0 : index
    %73 = vector.load %arg3[%c0_6, %c0_7, %c0_8, %c0_9] : memref<1x4x2x128xf32, #tpu.memory_space<vmem>>, vector<1x1x2x128xf32>
    %74 = vector.shape_cast %73 : vector<1x1x2x128xf32> to vector<2x128xf32>
    %75 = vector.shape_cast %72 : vector<2x128xf32> to vector<1x1x2x128xf32>
    tpu.vector_store %arg3[%c0_6, %c0_7, %c0_8, %c0_9], %75 {strides = array<i32>} : memref<1x4x2x128xf32, #tpu.memory_space<vmem>>, vector<1x1x2x128xf32>,
    %cst_10 = arith.constant 5.000000e-01 : f32
    %76 = vector.broadcast %cst_10 : f32 to vector<2x128xf32>
    %77 = arith.mulf %9, %76 : vector<2x128xf32>
    %cst_11 = arith.constant 2.500000e-01 : f32
    %78 = vector.broadcast %cst_11 : f32 to vector<2x128xf32>
    %79 = arith.mulf %32, %78 : vector<2x128xf32>
    %80 = arith.addf %77, %79 : vector<2x128xf32>
    %cst_12 = arith.constant 2.500000e-01 : f32
    %81 = vector.broadcast %cst_12 : f32 to vector<2x128xf32>
    %82 = arith.mulf %43, %81 : vector<2x128xf32>
    %83 = arith.addf %80, %82 : vector<2x128xf32>
    %c0_13 = arith.constant 0 : index
    %c1 = arith.constant 1 : index
    %c0_14 = arith.constant 0 : index
    %c0_15 = arith.constant 0 : index
    %84 = vector.load %arg3[%c0_13, %c1, %c0_14, %c0_15] : memref<1x4x2x128xf32, #tpu.memory_space<vmem>>, vector<1x1x2x128xf32>
    %85 = vector.shape_cast %84 : vector<1x1x2x128xf32> to vector<2x128xf32>
    %86 = vector.shape_cast %83 : vector<2x128xf32> to vector<1x1x2x128xf32>
    tpu.vector_store %arg3[%c0_13, %c1, %c0_14, %c0_15], %86 {strides = array<i32>} : memref<1x4x2x128xf32, #tpu.memory_space<vmem>>, vector<1x1x2x128xf32>,
    %cst_16 = arith.constant 2.500000e-01 : f32
    %87 = vector.broadcast %cst_16 : f32 to vector<2x128xf32>
    %88 = arith.mulf %9, %87 : vector<2x128xf32>
    %cst_17 = arith.constant 2.500000e-01 : f32
    %89 = vector.broadcast %cst_17 : f32 to vector<2x128xf32>
    %90 = arith.mulf %14, %89 : vector<2x128xf32>
    %91 = arith.addf %88, %90 : vector<2x128xf32>
    %cst_18 = arith.constant 2.500000e-01 : f32
    %92 = vector.broadcast %cst_18 : f32 to vector<2x128xf32>
    %93 = arith.mulf %32, %92 : vector<2x128xf32>
    %94 = arith.addf %91, %93 : vector<2x128xf32>
    %cst_19 = arith.constant 2.500000e-01 : f32
    %95 = vector.broadcast %cst_19 : f32 to vector<2x128xf32>
    %96 = arith.mulf %43, %95 : vector<2x128xf32>
    %97 = arith.addf %94, %96 : vector<2x128xf32>
    %c0_20 = arith.constant 0 : index
    %c2 = arith.constant 2 : index
    %c0_21 = arith.constant 0 : index
    %c0_22 = arith.constant 0 : index
    %98 = vector.load %arg3[%c0_20, %c2, %c0_21, %c0_22] : memref<1x4x2x128xf32, #tpu.memory_space<vmem>>, vector<1x1x2x128xf32>
    %99 = vector.shape_cast %98 : vector<1x1x2x128xf32> to vector<2x128xf32>
    %100 = vector.shape_cast %97 : vector<2x128xf32> to vector<1x1x2x128xf32>
    tpu.vector_store %arg3[%c0_20, %c2, %c0_21, %c0_22], %100 {strides = array<i32>} : memref<1x4x2x128xf32, #tpu.memory_space<vmem>>, vector<1x1x2x128xf32>,
    %cst_23 = arith.constant 2.500000e-01 : f32
    %101 = vector.broadcast %cst_23 : f32 to vector<2x128xf32>
    %102 = arith.mulf %9, %101 : vector<2x128xf32>
    %cst_24 = arith.constant 2.500000e-01 : f32
    %103 = vector.broadcast %cst_24 : f32 to vector<2x128xf32>
    %104 = arith.mulf %48, %103 : vector<2x128xf32>
    %105 = arith.addf %102, %104 : vector<2x128xf32>
    %cst_25 = arith.constant 2.500000e-01 : f32
    %106 = vector.broadcast %cst_25 : f32 to vector<2x128xf32>
    %107 = arith.mulf %53, %106 : vector<2x128xf32>
    %108 = arith.addf %105, %107 : vector<2x128xf32>
    %cst_26 = arith.constant 2.500000e-01 : f32
    %109 = vector.broadcast %cst_26 : f32 to vector<2x128xf32>
    %110 = arith.mulf %61, %109 : vector<2x128xf32>
    %111 = arith.addf %108, %110 : vector<2x128xf32>
    %c0_27 = arith.constant 0 : index
    %c3 = arith.constant 3 : index
    %c0_28 = arith.constant 0 : index
    %c0_29 = arith.constant 0 : index
    %112 = vector.load %arg3[%c0_27, %c3, %c0_28, %c0_29] : memref<1x4x2x128xf32, #tpu.memory_space<vmem>>, vector<1x1x2x128xf32>
    %113 = vector.shape_cast %112 : vector<1x1x2x128xf32> to vector<2x128xf32>
    %114 = vector.shape_cast %111 : vector<2x128xf32> to vector<1x1x2x128xf32>
    tpu.vector_store %arg3[%c0_27, %c3, %c0_28, %c0_29], %114 {strides = array<i32>} : memref<1x4x2x128xf32, #tpu.memory_space<vmem>>, vector<1x1x2x128xf32>,
    return
  }
  func.func @transform_0(%arg0: i32, %arg1: i32) -> (i32, i32, i32, i32) {
    %c0_i32 = arith.constant 0 : i32
    %c0_i32_0 = arith.constant 0 : i32
    %c0_i32_1 = arith.constant 0 : i32
    return %arg0, %c0_i32, %arg1, %c0_i32_0 : i32, i32, i32, i32
  }
  func.func @transform_1(%arg0: i32, %arg1: i32) -> (i32, i32, i32, i32) {
    %c0_i32 = arith.constant 0 : i32
    %c0_i32_0 = arith.constant 0 : i32
    %c0_i32_1 = arith.constant 0 : i32
    return %arg0, %c0_i32, %arg1, %c0_i32_0 : i32, i32, i32, i32
  }
}

</mosaic_0001>

<bundles_post_ra>
// kernel: tpu_custom_call.1
= control target key start
LH: loop header
LB: loop body
LE: loop exit
PB: predicated region body
PF: predicated region fallthrough
CT: control target
= control target key end

     0   :  { %6 = vsyncpa [#allocation3], 0  ;;  %s683_s0 = inlined_call_operand.hbm [shape: f32[2,4,2,128], index: 0, kind: input, shape index: {}]   ;;  %s684_s1 = inlined_call_operand.hbm [shape: f32[2,4,2,128], index: 1, kind: output, shape index: {}]  }
   0x1   :  { %8 = vsyncpa [#allocation3 + $0x1], 0 }
   0x2   :  { %9 = vsyncpa [#allocation4], 0 }
   0x3   :  { %11 = vsyncpa [#allocation4 + $0x1], 0  ;;  %s508_s6 = smov 0   ;;  %s510_s7 = smov 0  }
   0x4   :  { %s512_s8 = smov 0   ;;  %s514_s9 = smov 0  }
   0x5   :  { %s516_s10 = smov 0   ;;  %s518_s11 = smov 0  }
   0x6 LB: > { %s292_s12 = sadd.s32 4294967295, %s490_s11   ;;  %s293_s13 = sadd.s32 4294967294, %s490_s11   ;;  %s490_s11 = sphi %s518_s11, %s17_s11   ;;  %s486_s10 = sphi %s516_s10, %s699_s10   ;;  %s482_s9 = sphi %s514_s9, %s698_s9   ;;  %s478_s8 = sphi %s512_s8, %s697_s8   ;;  %s474_s7 = sphi %s510_s7, %s696_s7   ;;  %s470_s6 = sphi %s508_s6, %s695_s6  }
   0x7   : > { %s29_s14 = sadd.s32 1, %s486_s10  ;;  %s38_s15 = sadd.s32 1, %s478_s8 }
   0x8   : > { %p31_p0 = scmp.ge.s32.totalorder %s29_s14, 2  ;;  %p45_p1 = scmp.ne.s32.totalorder %s478_s8, %s474_s7 }
   0x9   : > { %p46_p2 = scmp.eq.s32.totalorder %s490_s11, 0  ;;  %p51_p3 = scmp.ne.s32.totalorder %s474_s7, %s470_s6 }
   0xa   : > { %s701_s14 = smov (%p31_p0, %s29_s14), 0  ;;  %p52_p5 = scmp.eq.s32.totalorder %s292_s12, 0 }
   0xb   : > { %p549_p4 = por %p46_p2, %p45_p1  ;;  %s33_s17 = ssub.s32 %s486_s10, %s701_s14 }
   0xc   : > { %p77_p6 = scmp.eq.s32.totalorder %s292_s12, 1  ;;  %p36_p7 = scmp.eq.s32.totalorder %s33_s17, 0 }
   0xd   : > { %p555_p8 = por %p52_p5, %p51_p3  ;;  %p83_p10 = scmp.eq.s32.totalorder %s293_s13, 1 }
   0xe   : > { %p559_p9 = por %p77_p6, %p45_p1  ;;  %p324_p13 = scmp.lt.s32.totalorder %s490_s11, 2 }
   0xf   : > { %s564_s20 = scalar_select %p36_p7, %s478_s8, %s38_s15  }
  0x10   : > { %s688_s19 = scalar_select %p559_p9, 1, 0 }
  0x11   : > { %p566_p11 = por %p83_p10, %p51_p3  ;;  %s103_s22 = sand.u32 1, %s478_s8  }
  0x12   : > { %s296_s23 = sshll.u32 %s103_s22, 3  ;;  %s310_s24 = sshll.u32 %s486_s10, 7 }
  0x13   : > { %s689_s21 = scalar_select %p566_p11, 1, 0 }
  0x14   : > { %s577_s27 = scalar_lea.hbm %s683_s0, %s310_s24  ;;  %s107_s28 = scalar_lea.vmem [#allocation2], %s296_s23 }
  0x15   : > { %s115_s29 = sshll.u32 %s107_s28, 4  ;;  %p583_p0 = pnand %p324_p13, %p549_p4  ;;  %s579_s29 = int_to_ptr.vmem [resolvable:$true] %s115_s29 }
  0x16   : > { %s588_s2 = scalar_lea.sflag [#allocation3], %s103_s22  ;;  %s378_s3 = scalar_lea.hbm %s577_s27, 128 }
  0x17   : > { %p379_p2 = scmp.ne.s32.totalorder %s577_s27, %s378_s3  ;;  %p380_p3 = pneg %p583_p0 }
  0x18   : > { %s383_s12 = scalar_lea.hbm %s683_s0, 256  ;;  %p384_p4 = scmp.lt.u32.totalorder %s577_s27, %s683_s0 }
  0x19   : > { %p381_p5 = pnand %p380_p3, %p379_p2  ;;  %p385_p7 = scmp.lt.u32.totalorder %s383_s12, %s378_s3 }
  0x1a   : > { %p387_p13 = scmp.lt.u32.totalorder %s378_s3, %s577_s27 }
  0x1b   : > { %p382_p6 = pneg %p381_p5  ;;  %p386_p10 = por %p385_p7, %p384_p4 }
  0x1d   : > { %p388_p12 = por %p387_p13, %p386_p10 }
  0x1f   : > { %p389_p1 = pnand %p388_p12, %p382_p6 }
  0x21   : > { %392 = shalt.err (!%p389_p1)
}
  0x22   : > { %s393_s16 = scalar_lea.vmem %s579_s29, 128  ;;  %s492_s17 = smov [#allocation2]  }
  0x23   : > { %p394_p2 = scmp.ne.s32.totalorder %s579_s29, %s393_s16  ;;  %s398_s22 = sshll.u32 %s492_s17, 4  ;;  %s399_s22 = int_to_ptr.vmem [resolvable:$false] %s398_s22 }
  0x24   : > { %s400_s23 = scalar_lea.vmem %s399_s22, 256  ;;  %p401_p9 = scmp.lt.s32.totalorder %s579_s29, %s399_s22 }
  0x25   : > { %p396_p5 = pnand %p394_p2, %p380_p3  ;;  %p402_p4 = scmp.lt.s32.totalorder %s400_s23, %s393_s16 }
  0x27   : > { %p397_p11 = pneg %p396_p5  ;;  %p403_p7 = por %p402_p4, %p401_p9 }
  0x29   : > { %p404_p10 = pnand %p403_p7, %p397_p11 }
  0x2b   : > { %407 = shalt.err (!%p404_p10)
}
  0x2c   : > { %s493_s24 = smov 32   ;;  %s494_s25 = smov 2  }
  0x2d   : > { %319 = dma.hbm_to_vmem [thread:$0]  (!%p583_p0), %s577_s27, 128, %s579_s29, %s588_s2, %s493_s24, %s493_s24, %s494_s25  }
  0x2e   : > { %p123_p12 = scmp.lt.s32.totalorder %s490_s11, 3  ;;  %p691_p1 = scmp.ge.s32.totalorder %s490_s11, 1 }
  0x30   : > { %p124_p3 = pnand %p691_p1, %p123_p12 }
  0x31   : > { %s620_s26 = sand.u32 (!%p124_p3), 1, %s474_s7  }
  0x32   : > { %127 = sbr.rel (%p124_p3) target bundleno = 87 (0x57), region = 24  ;;  %s300_s28 = sshll.u32 (!%p124_p3), %s620_s26, 3 }
  0x33   : > { %s130_s3 = scalar_lea.sflag (!%p124_p3), [#allocation3], %s620_s26  ;;  %s133_s4 = scalar_lea.vmem (!%p124_p3), [#allocation2], %s300_s28 }
  0x39   : > { %461 = dma.done.wait (%p555_p8), %s130_s3, 128  }
  0x3a   : > { %463 = vsyncadd (%p555_p8), %s130_s3, 4294967168  ;;  %v152_v0 = vld [vmem:[%s133_s4] sm:$0x3]  ;;  %v153_v1 = vld [vmem:[%s133_s4 + $0x2] sm:$0x3]  ;;  %s151_s18 = scalar_lea.vmem [#allocation5], %s300_s28 }
  0x3b   : > { %v154_v2 = vld [vmem:[%s133_s4 + $0x4] sm:$0x3]  ;;  %v155_v3 = vld [vmem:[%s133_s4 + $0x6] sm:$0x3]  ;;  %v156_v4 = vmax.f32 %v152_v0, %v153_v1  ;;  %s207_s27 = sshll.u32 %s151_s18, 4  ;;  %s311_s29 = sshll.u32 %s482_s9, 7  ;;  %s629_s27 = int_to_ptr.vmem [resolvable:$true] %s207_s27 }
  0x3c   : > { %v158_v5 = vmax.f32 %v153_v1, %v154_v2  ;;  %v160_v6 = vmax.f32 %v152_v0, %v154_v2  ;;  %v162_v7 = vmax.f32 %v152_v0, %v155_v3  ;;  %v163_v8 = vmax.f32 %v154_v2, %v155_v3  ;;  %s634_s5 = scalar_lea.hbm %s684_s1, %s311_s29  ;;  %s193_s9 = scalar_lea.sflag [#allocation4], %s620_s26 }
  0x3d   : > { %v157_v9 = vmax.f32 %v156_v4, %v154_v2  ;;  %v159_v10 = vmax.f32 %v156_v4, %v155_v3  ;;  %v166_v11 = vmul.f32 0.25, %v156_v4  ;;  %s408_s12 = scalar_lea.vmem %s629_s27, 128  ;;  %p692_p9 = scmp.ne.s32.totalorder %s688_s19, 0 }
  0x3e   : > { %v168_v12 = vmul.f32 0.25, %v158_v5  ;;  %v174_v13 = vmul.f32 0.25, %v160_v6  ;;  %v164_v14 = vmax.f32 %v158_v5, %v155_v3  ;;  %v184_v15 = vmul.f32 0.25, %v162_v7  ;;  %p409_p8 = scmp.ne.s32.totalorder %s629_s27, %s408_s12  ;;  %s495_s13 = smov [#allocation5]  }
  0x3f   : > { %v165_v16 = vmul.f32 0.25, %v157_v9  ;;  %v161_v17 = vmax.f32 %v157_v9, %v155_v3  ;;  %v173_v18 = vmul.f32 0.5, %v157_v9  ;;  %v186_v19 = vmul.f32 0.25, %v163_v8  ;;  %s412_s15 = sshll.u32 %s495_s13, 4  ;;  %s413_s15 = int_to_ptr.vmem [resolvable:$false] %s412_s15 }
  0x40   : > { %v170_v20 = vmul.f32 0.25, %v159_v10  ;;  %v188_v21 = vmul.f32 0.25, %v164_v14  ;;  %p410_p11 = pnand %p409_p8, %p692_p9  ;;  %s414_s16 = scalar_lea.vmem %s413_s15, 256 }
  0x41   : > { %v167_v22 = vadd.f32 %v166_v11, %v165_v16  ;;  %v175_v23 = vadd.f32 %v174_v13, %v173_v18  ;;  %v176_v24 = vmul.f32 0.25, %v161_v17  ;;  %v185_v25 = vadd.f32 %v184_v15, %v165_v16  ;;  %p415_p6 = scmp.lt.s32.totalorder %s629_s27, %s413_s15  ;;  %p416_p13 = scmp.lt.s32.totalorder %s414_s16, %s408_s12 }
  0x42   : > { %p411_p0 = pneg %p410_p11 }
  0x43   : > { %v169_v26 = vadd.f32 %v168_v12, %v167_v22  ;;  %v177_v27 = vadd.f32 %v176_v24, %v175_v23  ;;  %v180_v28 = vadd.f32 %v174_v13, %v167_v22  ;;  %v187_v29 = vadd.f32 %v186_v19, %v185_v25  ;;  %p417_p2 = por %p416_p13, %p415_p6 }
  0x45   : > { %v171_v30 = vadd.f32 %v170_v20, %v169_v26  ;;  %302 = vst [vmem:[%s151_s18 + $0x2] sm:$0x3] %v177_v27  ;;  %v181_v31 = vadd.f32 %v180_v28, %v176_v24  ;;  %v189_v32 = vadd.f32 %v188_v21, %v187_v29  ;;  %p418_p5 = pnand %p417_p2, %p411_p0 }
  0x47   : > { %172 = vst [vmem:[%s151_s18] sm:$0x3] %v171_v30  ;;  %303 = vst [vmem:[%s151_s18 + $0x4] sm:$0x3] %v181_v31 }
  0x48   : > { %304 = vst [vmem:[%s151_s18 + $0x6] sm:$0x3] %v189_v32 }
  0x49   : > { %421 = shalt.err (!%p418_p5)
}
  0x4a   : > { %s422_s17 = scalar_lea.hbm %s634_s5, 128  ;;  %s426_s24 = scalar_lea.hbm %s684_s1, 256 }
  0x4b   : > { %p423_p4 = scmp.ne.s32.totalorder %s634_s5, %s422_s17  ;;  %p427_p12 = scmp.lt.u32.totalorder %s634_s5, %s684_s1 }
  0x4c   : > { %p428_p1 = scmp.lt.u32.totalorder %s426_s24, %s422_s17  ;;  %p430_p8 = scmp.lt.u32.totalorder %s422_s17, %s634_s5 }
  0x4d   : > { %p424_p7 = pnand %p423_p4, %p692_p9 }
  0x4e   : > { %p429_p3 = por %p428_p1, %p427_p12 }
  0x4f   : > { %p425_p10 = pneg %p424_p7 }
  0x50   : > { %p431_p11 = por %p430_p8, %p429_p3 }
  0x52   : > { %p432_p0 = pnand %p431_p11, %p425_p10 }
  0x54   : > { %435 = shalt.err (!%p432_p0)
}
  0x55   : > { %s496_s3 = smov 32   ;;  %s497_s4 = smov 2  }
  0x56   : > { %314 = dma.vmem_to_hbm [thread:$0]  (%p692_p9), %s629_s27, 128, %s634_s5, %s193_s9, %s496_s3, %s496_s3, %s497_s4  }
  0x57 PF: > { %s222_s18 = sand.u32 1, %s470_s6   ;;  %p693_p6 = scmp.ne.s32.totalorder %s689_s21, 0 }
  0x58   : > { %p694_p13 = scmp.ge.s32.totalorder %s490_s11, 2  ;;  %s223_s29 = scalar_lea.sflag [#allocation4], %s222_s18 }
  0x5a   : > { %p321_p2 = pnand %p694_p13, %p693_p6 }
  0x5c   : > { %465 = dma.done.wait (!%p321_p2), %s223_s29, 128  }
  0x5d   : > { %467 = vsyncadd (!%p321_p2), %s223_s29, 4294967168  ;;  %s17_s11 = sadd.s32 1, %s490_s11   ;;  %s695_s6 = smov %s474_s7 }
  0x5e   : > { %p14_p5 = scmp.ge.s32.totalorder %s17_s11, 4   ;;  %s696_s7 = smov %s478_s8 }
  0x5f   : > { %s697_s8 = smov %s564_s20  ;;  %s698_s9 = smov %s486_s10 }
  0x60   : > { %s699_s10 = smov %s701_s14  ;;  %16 = sbr.rel (!%p14_p5) target bundleno = 6 (0x6), region = 72 }
  0x67   :  { %228 = vsyncpa [#allocation3], 1 }
  0x68   :  { %230 = vsyncpa [#allocation3 + $0x1], 1 }
  0x69   :  { %231 = vsyncpa [#allocation4], 1 }
  0x6a   :  { %233 = vsyncpa [#allocation4 + $0x1], 1 }

</bundles_post_ra>
